<compile_context>
chip_gen: v7x
topology: tpu7x:2x2x1
jax: 0.10.0
libtpu: 0.0.40
codegen_flags: <defaults>
</compile_context>

<pallas_src>
import math

import jax
import jax.numpy as jnp
from jax.experimental import pallas as pl
from jax.experimental.pallas import tpu as pltpu

BN_EPS = 1e-5
_TM_MAX = 1024        # rows of x per stats-pass grid step
_ROW_TARGET = 1024    # target rows (TB*N) per apply-pass grid step
_STATS_SPLIT = 2      # partial accumulators (both v7x TensorCores; harmless elsewhere)


def _vmem_limit_bytes():
    """~3/4 of physical VMEM: ~48 MiB on v7x (64 MiB), ~96 MiB on v5e/v6e (128 MiB)."""
    try:
        cap = int(pltpu.get_tpu_info().vmem_capacity_bytes)
        if cap > 0:
            return (cap * 3) // 4
    except Exception:
        pass
    return 48 * 1024 * 1024


def aufea_forward(x, fc_w, fc_b, bn_gamma, bn_beta):
    """x: (B, N, C); fc_w: (K, C, C) (out, in); fc_b/bn_gamma/bn_beta: (K, C).
    Returns f_u: (B, K, N, C), matching training-mode BatchNorm1d."""
    B, N, C = x.shape
    K = fc_w.shape[0]
    KC = K * C
    M = B * N

    x = x.astype(jnp.float32)
    x2d = x.reshape(M, C)                      # metadata-only reshape
    vmem_limit = _vmem_limit_bytes()

    # ---------------- pass 1: Gram matrix + column sums of x ----------------
    tm = M if M <= _TM_MAX else _TM_MAX        # == M (full dim) or mult. of 8
    n_tiles = pl.cdiv(M, tm)
    P = _STATS_SPLIT
    n_inner = pl.cdiv(n_tiles, P)
    padded = (P * n_inner * tm) != M           # any ragged / duplicate tiles?

    def stats_kernel(x_ref, gram_ref, sum_ref):
        @pl.when(pl.program_id(1) == 0)
        def _():
            gram_ref[...] = jnp.zeros_like(gram_ref)
            sum_ref[...] = jnp.zeros_like(sum_ref)

        xv = x_ref[...]                                           # (tm, C) f32
        if padded:
            tile = pl.program_id(0) * n_inner + pl.program_id(1)
            row0 = tile * tm
            rows = jax.lax.broadcasted_iota(jnp.int32, (tm, 1), 0) + row0
            xv = jnp.where(rows < M, xv, 0.0)                     # zero OOB rows
        xb = xv.astype(jnp.bfloat16)                              # MXU operand
        # G += x^T @ x : lhs-contraction on dim 0, f32 accumulation on the MXU.
        gram_ref[...] += jax.lax.dot_general(
            xb, xb, (((0,), (0,)), ((), ())),
            preferred_element_type=jnp.float32)                   # (C, C)
        # Column sums of the bf16-rounded x (exact when widened to f32).
        sum_ref[...] += jnp.sum(xb.astype(jnp.float32), axis=0, keepdims=True)

    gram_parts, sum_parts = pl.pallas_call(
        stats_kernel,
        out_shape=(jax.ShapeDtypeStruct((P, C, C), jnp.float32),
                   jax.ShapeDtypeStruct((P, 1, C), jnp.float32)),
        grid_spec=pltpu.PrefetchScalarGridSpec(
            num_scalar_prefetch=0,
            grid=(P, n_inner),
            in_specs=[
                # Clamp the block index so fully-OOB steps re-read a valid tile
                # (their contribution is masked to zero in the kernel).
                pl.BlockSpec(
                    (tm, C),
                    lambda p, i: (jnp.minimum(p * n_inner + i, n_tiles - 1), 0)),
            ],
            out_specs=[
                pl.BlockSpec((None, C, C), lambda p, i: (p, 0, 0)),   # Gram partial
                pl.BlockSpec((None, 1, C), lambda p, i: (p, 0, 0)),   # sum partial
            ],
        ),
        compiler_params=pltpu.CompilerParams(
            dimension_semantics=("parallel", "arbitrary"),
            vmem_limit_bytes=vmem_limit),
    )(x2d)

    # -------- fold training-mode BN into a per-(class,channel) affine --------
    gram = jnp.sum(gram_parts, axis=0)                            # (C, C)
    xsum = jnp.sum(sum_parts, axis=0)                             # (1, C)

    # W_all[c_in, k*C + c_out] = fc_w[k, c_out, c_in]; bf16-rounded (what the
    # MXU sees) but kept in f32 for the stats math.
    w_all = jnp.transpose(fc_w, (2, 0, 1)).reshape(C, KC)
    w_allq = w_all.astype(jnp.bfloat16).astype(jnp.float32)

    hi = jax.lax.Precision.HIGHEST
    col_sum = jnp.dot(xsum, w_allq, precision=hi)                 # (1, KC)  sum_m z
    col_sq = jnp.sum(w_allq * jnp.dot(gram, w_allq, precision=hi),
                     axis=0, keepdims=True)                       # (1, KC)  sum_m z^2

    # y = z + b; mean_y = mean_z + b, so the Linear bias cancels exactly:
    #   BN(y)*gamma + beta = z*a + (beta - mean_z*a),   a = gamma*rstd.
    # (fc_b intentionally unused under training-mode BN.)
    mean_z = col_sum / M
    var = jnp.maximum(col_sq / M - mean_z * mean_z, 0.0)          # biased variance
    rstd = jax.lax.rsqrt(var + BN_EPS)
    a = bn_gamma.astype(jnp.float32).reshape(1, KC) * rstd
    c = bn_beta.astype(jnp.float32).reshape(1, KC) - mean_z * a
    a = a.reshape(K, 1, C)
    c = c.reshape(K, 1, C)

    # ---------------- pass 2: per-class matmul + BN affine + ReLU -----------
    # Per-class weights in (c_in, c_out) order so z_k = x @ w[k].
    w_apply = jnp.transpose(fc_w, (0, 2, 1)).astype(jnp.bfloat16)  # (K, C, C)

    # TB batch elements per step (TB divides B) so TB*N rows feed one matmul.
    max_tb = max(1, _ROW_TARGET // N)
    tb = 1
    for d in range(min(B, max_tb), 0, -1):
        if B % d == 0:
            tb = d
            break

    def apply_kernel(x_ref, w_ref, a_ref, c_ref, o_ref):
        xb = x_ref[...].reshape(tb * N, C).astype(jnp.bfloat16)
        z = jnp.dot(xb, w_ref[...], preferred_element_type=jnp.float32)
        y = jnp.maximum(z * a_ref[...] + c_ref[...], 0.0)
        o_ref[...] = y.reshape(tb, 1, N, C).astype(o_ref.dtype)

    f_u = pl.pallas_call(
        apply_kernel,
        # float32 to match the PyTorch module; change to bfloat16 to halve the
        # dominant HBM write stream if downstream consumers tolerate it.
        out_shape=jax.ShapeDtypeStruct((B, K, N, C), jnp.float32),
        grid_spec=pltpu.PrefetchScalarGridSpec(
            num_scalar_prefetch=0,
            grid=(B // tb, K),          # class axis innermost: x tile stays resident
            in_specs=[
                pl.BlockSpec((tb, N, C), lambda b, k: (b, 0, 0)),     # x tile
                pl.BlockSpec((None, C, C), lambda b, k: (k, 0, 0)),   # W_k
                pl.BlockSpec((None, 1, C), lambda b, k: (k, 0, 0)),   # scale a_k
                pl.BlockSpec((None, 1, C), lambda b, k: (k, 0, 0)),   # shift c_k
            ],
            out_specs=pl.BlockSpec((tb, 1, N, C), lambda b, k: (b, k, 0, 0)),
        ),
        compiler_params=pltpu.CompilerParams(
            dimension_semantics=("parallel", "parallel"),
            vmem_limit_bytes=vmem_limit),
    )(x, w_apply, a, c)

    return f_u


def aufea_reference(x, fc_w, fc_b, bn_gamma, bn_beta):
    """Pure-JAX f32 reference mirroring the PyTorch forward (training-mode BN)."""
    K = fc_w.shape[0]
    outs = []
    for i in range(K):
        y = jnp.einsum("bnc,oc->bno", x, fc_w[i]) + fc_b[i]
        mean = jnp.mean(y, axis=(0, 1), keepdims=True)
        var = jnp.mean((y - mean) ** 2, axis=(0, 1), keepdims=True)
        y = (y - mean) / jnp.sqrt(var + BN_EPS) * bn_gamma[i] + bn_beta[i]
        outs.append(jnp.maximum(y, 0.0)[:, None])
    return jnp.concatenate(outs, axis=1)


if __name__ == "__main__":
    # Small shapes consistent with the module: x of shape (B, N, in_channels).
    B, N = 2, 8
    in_channels, num_classes = 32, 4

    key = jax.random.PRNGKey(0)
    kx, kw, kb, kg, kbe, ksc = jax.random.split(key, 6)

    x = jax.random.normal(kx, (B, N, in_channels), dtype=jnp.float32)

    # Deterministic parameter init (fc like LinearBlock init; BN affine is
    # perturbed away from 1/0 so the affine path is actually exercised).
    fc_w = jax.random.normal(kw, (num_classes, in_channels, in_channels),
                             dtype=jnp.float32) * math.sqrt(2.0 / in_channels)
    bound = 1.0 / math.sqrt(in_channels)
    fc_b = jax.random.uniform(kb, (num_classes, in_channels),
                              minval=-bound, maxval=bound, dtype=jnp.float32)
    bn_gamma = 1.0 + 0.1 * jax.random.normal(
        kg, (num_classes, in_channels), dtype=jnp.float32)
    bn_beta = 0.05 * jax.random.normal(
        kbe, (num_classes, in_channels), dtype=jnp.float32)

    # self.sc is a parameter of AUFea but is NOT used in forward(); created for parity.
    limit = math.sqrt(6.0 / (num_classes + in_channels))  # xavier_uniform_
    sc = jax.random.uniform(ksc, (num_classes, in_channels),
                            minval=-limit, maxval=limit, dtype=jnp.float32)

    f_u = jax.block_until_ready(
        jax.jit(aufea_forward)(x, fc_w, fc_b, bn_gamma, bn_beta))

    # Tight check: reference fed the same bf16-rounded x / W that the MXU sees.
    xq = x.astype(jnp.bfloat16).astype(jnp.float32)
    wq = fc_w.astype(jnp.bfloat16).astype(jnp.float32)
    ref_q = aufea_reference(xq, wq, fc_b, bn_gamma, bn_beta)
    # Loose check: full-f32 PyTorch-equivalent reference (covers bf16 rounding).
    ref_f32 = aufea_reference(x, fc_w, fc_b, bn_gamma, bn_beta)

    assert f_u.shape == (B, num_classes, N, in_channels), f_u.shape
    assert jnp.allclose(f_u, ref_q, atol=1e-3, rtol=1e-3), \
        float(jnp.max(jnp.abs(f_u - ref_q)))
    assert jnp.allclose(f_u, ref_f32, atol=5e-2, rtol=5e-2), \
        float(jnp.max(jnp.abs(f_u - ref_f32)))
    print("KERNEL_OK")
</pallas_src>

<mosaic_0001>
module attributes {stable_mosaic.version = 11 : i64} {
  func.func @stats_kernel(%arg0: i32, %arg1: i32, %arg2: memref<16x32xf32, #tpu.memory_space<vmem>>, %arg3: memref<1x32x32xf32, #tpu.memory_space<vmem>>, %arg4: memref<1x1x32xf32, #tpu.memory_space<vmem>>) attributes {dimension_semantics = [#tpu.dimension_semantics<parallel>, #tpu.dimension_semantics<arbitrary>], iteration_bounds = array<i64: 2, 1>, scalar_prefetch = 0 : i64, scratch_operands = 0 : i64, tpu.core_type = #tpu.core_type<tc>, window_params = [{transform_indices = @transform_0, window_bounds = array<i64: 16, 32>}, {transform_indices = @transform_1, window_bounds = array<i64: 1, 32, 32>}, {transform_indices = @transform_2, window_bounds = array<i64: 1, 1, 32>}]} {
    %c0_i32 = arith.constant 0 : i32
    %0 = arith.cmpi eq, %arg1, %c0_i32 : i32
    %1 = arith.extui %0 : i1 to i32
    %c0_i32_0 = arith.constant 0 : i32
    %2 = arith.cmpi ne, %1, %c0_i32_0 : i32
    scf.if %2 {
      %cst_17 = arith.constant 0.000000e+00 : f32
      %33 = vector.broadcast %cst_17 : f32 to vector<32x32xf32>
      %c0_18 = arith.constant 0 : index
      %c0_19 = arith.constant 0 : index
      %c0_20 = arith.constant 0 : index
      %34 = vector.load %arg3[%c0_18, %c0_19, %c0_20] : memref<1x32x32xf32, #tpu.memory_space<vmem>>, vector<1x32x32xf32>
      %35 = vector.shape_cast %34 : vector<1x32x32xf32> to vector<32x32xf32>
      %36 = vector.shape_cast %33 : vector<32x32xf32> to vector<1x32x32xf32>
      tpu.vector_store %arg3[%c0_18, %c0_19, %c0_20], %36 {strides = array<i32>} : memref<1x32x32xf32, #tpu.memory_space<vmem>>, vector<1x32x32xf32>,
      %cst_21 = arith.constant 0.000000e+00 : f32
      %37 = vector.broadcast %cst_21 : f32 to vector<1x32xf32>
      %c0_22 = arith.constant 0 : index
      %c0_23 = arith.constant 0 : index
      %c0_24 = arith.constant 0 : index
      %38 = vector.load %arg4[%c0_22, %c0_23, %c0_24] : memref<1x1x32xf32, #tpu.memory_space<vmem>>, vector<1x1x32xf32>
      %39 = vector.shape_cast %38 : vector<1x1x32xf32> to vector<1x32xf32>
      %40 = vector.shape_cast %37 : vector<1x32xf32> to vector<1x1x32xf32>
      tpu.vector_store %arg4[%c0_22, %c0_23, %c0_24], %40 {strides = array<i32>} : memref<1x1x32xf32, #tpu.memory_space<vmem>>, vector<1x1x32xf32>,
    } else {
    }
    %c0 = arith.constant 0 : index
    %c0_1 = arith.constant 0 : index
    %3 = vector.load %arg2[%c0, %c0_1] : memref<16x32xf32, #tpu.memory_space<vmem>>, vector<16x32xf32>
    %c1_i32 = arith.constant 1 : i32
    %4 = arith.muli %arg0, %c1_i32 : i32
    %5 = arith.addi %4, %arg1 : i32
    %c16_i32 = arith.constant 16 : i32
    %6 = arith.muli %5, %c16_i32 : i32
    %7 = tpu.iota {dimensions = array<i32: 0>} : vector<16x1xi32>
    %8 = vector.broadcast %6 : i32 to vector<16x1xi32>
    %9 = arith.addi %7, %8 : vector<16x1xi32>
    %c16_i32_2 = arith.constant 16 : i32
    %10 = vector.broadcast %c16_i32_2 : i32 to vector<16x1xi32>
    %11 = arith.cmpi slt, %9, %10 : vector<16x1xi32>
    %cst = arith.constant 0.000000e+00 : f32
    %12 = vector.shape_cast %11 : vector<16x1xi1> to vector<16x1xi1>
    %13 = vector.broadcast %12 : vector<16x1xi1> to vector<16x32xi1>
    %14 = vector.broadcast %cst : f32 to vector<16x32xf32>
    %15 = arith.select %13, %3, %14 : vector<16x32xi1>, vector<16x32xf32>
    %16 = arith.truncf %15 : vector<16x32xf32> to vector<16x32xbf16>
    %c0_3 = arith.constant 0 : index
    %c0_4 = arith.constant 0 : index
    %c0_5 = arith.constant 0 : index
    %17 = vector.load %arg3[%c0_3, %c0_4, %c0_5] : memref<1x32x32xf32, #tpu.memory_space<vmem>>, vector<1x32x32xf32>
    %18 = vector.shape_cast %17 : vector<1x32x32xf32> to vector<32x32xf32>
    %cst_6 = arith.constant dense<0.000000e+00> : vector<32x32xf32>
    %19 = tpu.matmul %16, %16, %cst_6 {dimension_numbers = #tpu.dot_dimension_numbers<[0], [0], [1], [1], [0, 1, 1, 1], [], []>} : vector<16x32xbf16>, vector<16x32xbf16>, vector<32x32xf32> -> vector<32x32xf32>
    %20 = arith.addf %18, %19 : vector<32x32xf32>
    %c0_7 = arith.constant 0 : index
    %c0_8 = arith.constant 0 : index
    %c0_9 = arith.constant 0 : index
    %21 = vector.load %arg3[%c0_7, %c0_8, %c0_9] : memref<1x32x32xf32, #tpu.memory_space<vmem>>, vector<1x32x32xf32>
    %22 = vector.shape_cast %21 : vector<1x32x32xf32> to vector<32x32xf32>
    %23 = vector.shape_cast %20 : vector<32x32xf32> to vector<1x32x32xf32>
    tpu.vector_store %arg3[%c0_7, %c0_8, %c0_9], %23 {strides = array<i32>} : memref<1x32x32xf32, #tpu.memory_space<vmem>>, vector<1x32x32xf32>,
    %c0_10 = arith.constant 0 : index
    %c0_11 = arith.constant 0 : index
    %c0_12 = arith.constant 0 : index
    %24 = vector.load %arg4[%c0_10, %c0_11, %c0_12] : memref<1x1x32xf32, #tpu.memory_space<vmem>>, vector<1x1x32xf32>
    %25 = vector.shape_cast %24 : vector<1x1x32xf32> to vector<1x32xf32>
    %26 = arith.extf %16 : vector<16x32xbf16> to vector<16x32xf32>
    %cst_13 = arith.constant dense<0.000000e+00> : vector<32xf32>
    %27 = vector.multi_reduction <add>, %26, %cst_13 [0] : vector<16x32xf32> to vector<32xf32>
    %28 = vector.shape_cast %27 : vector<32xf32> to vector<1x32xf32>
    %29 = arith.addf %25, %28 : vector<1x32xf32>
    %c0_14 = arith.constant 0 : index
    %c0_15 = arith.constant 0 : index
    %c0_16 = arith.constant 0 : index
    %30 = vector.load %arg4[%c0_14, %c0_15, %c0_16] : memref<1x1x32xf32, #tpu.memory_space<vmem>>, vector<1x1x32xf32>
    %31 = vector.shape_cast %30 : vector<1x1x32xf32> to vector<1x32xf32>
    %32 = vector.shape_cast %29 : vector<1x32xf32> to vector<1x1x32xf32>
    tpu.vector_store %arg4[%c0_14, %c0_15, %c0_16], %32 {strides = array<i32>} : memref<1x1x32xf32, #tpu.memory_space<vmem>>, vector<1x1x32xf32>,
    return
  }
  func.func @transform_0(%arg0: i32, %arg1: i32) -> (i32, i32) {
    %c1_i32 = arith.constant 1 : i32
    %0 = arith.muli %arg0, %c1_i32 : i32
    %1 = arith.addi %0, %arg1 : i32
    %c0_i32 = arith.constant 0 : i32
    %2 = arith.minsi %1, %c0_i32 : i32
    %c0_i32_0 = arith.constant 0 : i32
    %c0_i32_1 = arith.constant 0 : i32
    return %2, %c0_i32_0 : i32, i32
  }
  func.func @transform_1(%arg0: i32, %arg1: i32) -> (i32, i32, i32) {
    %c0_i32 = arith.constant 0 : i32
    %c0_i32_0 = arith.constant 0 : i32
    %c0_i32_1 = arith.constant 0 : i32
    return %arg0, %c0_i32, %c0_i32_0 : i32, i32, i32
  }
  func.func @transform_2(%arg0: i32, %arg1: i32) -> (i32, i32, i32) {
    %c0_i32 = arith.constant 0 : i32
    %c0_i32_0 = arith.constant 0 : i32
    %c0_i32_1 = arith.constant 0 : i32
    return %arg0, %c0_i32, %c0_i32_0 : i32, i32, i32
  }
}

module attributes {stable_mosaic.version = 11 : i64} {
  func.func @apply_kernel(%arg0: i32, %arg1: i32, %arg2: memref<2x8x32xf32, #tpu.memory_space<vmem>>, %arg3: memref<1x32x32xbf16, #tpu.memory_space<vmem>>, %arg4: memref<1x1x32xf32, #tpu.memory_space<vmem>>, %arg5: memref<1x1x32xf32, #tpu.memory_space<vmem>>, %arg6: memref<2x1x8x32xf32, #tpu.memory_space<vmem>>) attributes {dimension_semantics = [#tpu.dimension_semantics<parallel>, #tpu.dimension_semantics<parallel>], iteration_bounds = array<i64: 1, 4>, scalar_prefetch = 0 : i64, scratch_operands = 0 : i64, tpu.core_type = #tpu.core_type<tc>, window_params = [{transform_indices = @transform_0, window_bounds = array<i64: 2, 8, 32>}, {transform_indices = @transform_1, window_bounds = array<i64: 1, 32, 32>}, {transform_indices = @transform_2, window_bounds = array<i64: 1, 1, 32>}, {transform_indices = @transform_3, window_bounds = array<i64: 1, 1, 32>}, {transform_indices = @transform_4, window_bounds = array<i64: 2, 1, 8, 32>}]} {
    %c0 = arith.constant 0 : index
    %c0_0 = arith.constant 0 : index
    %c0_1 = arith.constant 0 : index
    %0 = vector.load %arg2[%c0, %c0_0, %c0_1] : memref<2x8x32xf32, #tpu.memory_space<vmem>>, vector<2x8x32xf32>
    %1 = vector.shape_cast %0 : vector<2x8x32xf32> to vector<16x32xf32>
    %2 = arith.truncf %1 : vector<16x32xf32> to vector<16x32xbf16>
    %c0_2 = arith.constant 0 : index
    %c0_3 = arith.constant 0 : index
    %c0_4 = arith.constant 0 : index
    %3 = vector.load %arg3[%c0_2, %c0_3, %c0_4] : memref<1x32x32xbf16, #tpu.memory_space<vmem>>, vector<1x32x32xbf16>
    %4 = vector.shape_cast %3 : vector<1x32x32xbf16> to vector<32x32xbf16>
    %cst = arith.constant dense<0.000000e+00> : vector<16x32xf32>
    %5 = tpu.matmul %2, %4, %cst {dimension_numbers = #tpu.dot_dimension_numbers<[1], [0], [0], [1], [0, 0, 1, 1], [], []>} : vector<16x32xbf16>, vector<32x32xbf16>, vector<16x32xf32> -> vector<16x32xf32>
    %c0_5 = arith.constant 0 : index
    %c0_6 = arith.constant 0 : index
    %c0_7 = arith.constant 0 : index
    %6 = vector.load %arg4[%c0_5, %c0_6, %c0_7] : memref<1x1x32xf32, #tpu.memory_space<vmem>>, vector<1x1x32xf32>
    %7 = vector.shape_cast %6 : vector<1x1x32xf32> to vector<1x32xf32>
    %8 = vector.broadcast %7 : vector<1x32xf32> to vector<16x32xf32>
    %9 = arith.mulf %5, %8 : vector<16x32xf32>
    %c0_8 = arith.constant 0 : index
    %c0_9 = arith.constant 0 : index
    %c0_10 = arith.constant 0 : index
    %10 = vector.load %arg5[%c0_8, %c0_9, %c0_10] : memref<1x1x32xf32, #tpu.memory_space<vmem>>, vector<1x1x32xf32>
    %11 = vector.shape_cast %10 : vector<1x1x32xf32> to vector<1x32xf32>
    %12 = vector.broadcast %11 : vector<1x32xf32> to vector<16x32xf32>
    %13 = arith.addf %9, %12 : vector<16x32xf32>
    %cst_11 = arith.constant 0.000000e+00 : f32
    %14 = vector.broadcast %cst_11 : f32 to vector<16x32xf32>
    %15 = arith.maximumf %13, %14 : vector<16x32xf32>
    %16 = vector.shape_cast %15 : vector<16x32xf32> to vector<2x1x8x32xf32>
    %c0_12 = arith.constant 0 : index
    %c0_13 = arith.constant 0 : index
    %c0_14 = arith.constant 0 : index
    %c0_15 = arith.constant 0 : index
    %17 = vector.load %arg6[%c0_12, %c0_13, %c0_14, %c0_15] : memref<2x1x8x32xf32, #tpu.memory_space<vmem>>, vector<2x1x8x32xf32>
    tpu.vector_store %arg6[%c0_12, %c0_13, %c0_14, %c0_15], %16 {strides = array<i32>} : memref<2x1x8x32xf32, #tpu.memory_space<vmem>>, vector<2x1x8x32xf32>,
    return
  }
  func.func @transform_0(%arg0: i32, %arg1: i32) -> (i32, i32, i32) {
    %c0_i32 = arith.constant 0 : i32
    %c0_i32_0 = arith.constant 0 : i32
    %c0_i32_1 = arith.constant 0 : i32
    return %arg0, %c0_i32, %c0_i32_0 : i32, i32, i32
  }
  func.func @transform_1(%arg0: i32, %arg1: i32) -> (i32, i32, i32) {
    %c0_i32 = arith.constant 0 : i32
    %c0_i32_0 = arith.constant 0 : i32
    %c0_i32_1 = arith.constant 0 : i32
    return %arg1, %c0_i32, %c0_i32_0 : i32, i32, i32
  }
  func.func @transform_2(%arg0: i32, %arg1: i32) -> (i32, i32, i32) {
    %c0_i32 = arith.constant 0 : i32
    %c0_i32_0 = arith.constant 0 : i32
    %c0_i32_1 = arith.constant 0 : i32
    return %arg1, %c0_i32, %c0_i32_0 : i32, i32, i32
  }
  func.func @transform_3(%arg0: i32, %arg1: i32) -> (i32, i32, i32) {
    %c0_i32 = arith.constant 0 : i32
    %c0_i32_0 = arith.constant 0 : i32
    %c0_i32_1 = arith.constant 0 : i32
    return %arg1, %c0_i32, %c0_i32_0 : i32, i32, i32
  }
  func.func @transform_4(%arg0: i32, %arg1: i32) -> (i32, i32, i32, i32) {
    %c0_i32 = arith.constant 0 : i32
    %c0_i32_0 = arith.constant 0 : i32
    %c0_i32_1 = arith.constant 0 : i32
    return %arg0, %arg1, %c0_i32, %c0_i32_0 : i32, i32, i32, i32
  }
}

</mosaic_0001>

<bundles_post_ra>
// kernel: aufea_forward.2
= control target key start
LH: loop header
LB: loop body
LE: loop exit
PB: predicated region body
PF: predicated region fallthrough
CT: control target
= control target key end

     0   :  { %s500_s9 = smov 0   ;;  %s502_s10 = smov 0   ;;  %s567_s0 = inlined_call_operand.vmem [shape: f32[16,32], index: 0, kind: input, shape index: {}]   ;;  %s568_s1 = inlined_call_operand.vmem [shape: f32[2,32,32], index: 1, kind: output, shape index: {0}]   ;;  %s569_s2 = inlined_call_operand.vmem [shape: f32[2,1,32], index: 2, kind: output, shape index: {1}]  }
   0x1   :  { %s504_s11 = smov 0  }
   0x2 LB: > { %s25_s12 = sadd.s32 1, %s478_s10  ;;  %p411_p0 = scmp.ge.s32.totalorder %s482_s11, 1  ;;  %s482_s11 = sphi %s504_s11, %s13_s11   ;;  %s478_s10 = sphi %s502_s10, %s571_s10   ;;  %s474_s9 = sphi %s500_s9, %s570_s9  }
   0x3   : > { %p27_p1 = scmp.ge.s32.totalorder %s25_s12, 2  ;;  %p140_p2 = scmp.lt.s32.totalorder %s482_s11, 3 }
   0x5   : > { %s573_s12 = smov (%p27_p1, %s25_s12), 0  ;;  %p141_p3 = pnand %p411_p0, %p140_p2 }
   0x6   : > { %p169_p4 = scmp.lt.s32.totalorder (!%p141_p3), %s474_s9, 0  ;;  %p180_p5 = scmp.lt.s32.totalorder (!%p141_p3), %s474_s9, 1  ;;  %v204_v0 = vlaneseq (!%p141_p3)  ;;  %vm198_vm0 = vcmask (!%p141_p3), 253952   ;;  %vm193_vm1 = vcmask (!%p141_p3), 261120   ;;  %v484_v6 = vmov (!%p141_p3), 0.0  }
   0x7   : > { %144 = sbr.rel (%p141_p3) target bundleno = 351 (0x15f), region = 24  ;;  %s416_s13 = sshll.u32 (!%p141_p3), %s474_s9, 4  ;;  %vm239_vm5 = vcmask (!%p141_p3), 130048  }
   0x8   : > { %v205_v1 = vshrl.u32 (!%p141_p3), %v204_v0, 7  ;;  %v207_v2 = vstv (!%p141_p3), %s416_s13 }
   0xa   : > { %v206_v3 = vadd.s32 (!%p141_p3), 8, %v205_v1  ;;  %v208_v4 = vadd.s32 (!%p141_p3), %v207_v2, %v205_v1 }
   0xc   : > { %v209_v5 = vadd.s32 (!%p141_p3), %v207_v2, %v206_v3  ;;  %vm210_vm2 = vcmp.lt.s32.totalorder (!%p141_p3), %v208_v4, 16 }
   0xe   : > { %s170_s14 = scalar_select %p169_p4, %s474_s9, 0  ;;  %vm211_vm3 = vcmp.lt.s32.totalorder %v209_v5, 16 }
   0xf   : > { %s575_s9 = smov (!%p180_p5, %s474_s9), 1  ;;  %vm417_vm4 = vmpackc.low %vm211_vm3, %vm210_vm2 }
  0x10   : > { %s412_s15 = sshll.u32 %s170_s14, 1  ;;  %s424_s16 = sshll.u32 %s575_s9, 5 }
  0x11   : > { %p172_p6 = scmp.lt.s32.totalorder %s412_s15, 1  ;;  %s521_s19 = scalar_lea.vmem %s568_s1, %s424_s16 }
  0x12   : > { %s526_s22 = scalar_lea.vmem %s569_s2, %s575_s9  ;;  %194 = vst.msk [vmem:[%s521_s19] sm:$0xff] %vm193_vm1, %v484_v6  ;;  %195 = vst.msk [vmem:[%s521_s19 + $0x8] sm:$0xff] %vm193_vm1, %v484_v6 }
  0x13   : > { %s577_s15 = smov (!%p172_p6, %s412_s15), 1  ;;  %199 = vst.msk [vmem:[%s526_s22] sm:$0x1] %vm198_vm0, %v484_v6 }
  0x14   : > { %196 = vst.msk [vmem:[%s521_s19 + $0x10] sm:$0xff] %vm193_vm1, %v484_v6  ;;  %197 = vst.msk [vmem:[%s521_s19 + $0x18] sm:$0xff] %vm193_vm1, %v484_v6  ;;  %s413_s23 = sshll.u32 %s577_s15, 3 }
  0x15   : > { %s175_s26 = scalar_lea.vmem %s567_s0, %s413_s23 }
  0x16   : > { %v200_v7 = vld [vmem:[%s175_s26] sm:$0xff]  ;;  %v201_v8 = vld [vmem:[%s175_s26 + $0x8] sm:$0xff] }
  0x17   : > { %v216_v9 = vsel %vm210_vm2, %v200_v7, 0.0  ;;  %v217_v10 = vsel %vm211_vm3, %v201_v8, 0.0  ;;  %v418_v11 = vpack.c.bf16 %v201_v8, %v200_v7 }
  0x18   : > { %v218_v12 = vpack.c.bf16 %v217_v10, %v216_v9 }
  0x19   : > { %428 = vmatprep.subr.msk.bf16.mxu0 %vm417_vm4, %v418_v11  ;;  %v219_v29 = vld [vmem:[%s521_s19] sm:$0xff]  ;;  %v220_v34 = vld [vmem:[%s521_s19 + $0x8] sm:$0xff] }
  0x1a   : > { %223 = vxpose.xlu0.c.b16.start.end [1/1] (short) (narrow) %v218_v12, 32  ;;  %v305_v13 = vunpack.c.l.bf16 %v218_v12  ;;  %v306_v14 = vunpack.c.h.bf16 %v218_v12  ;;  %429 = vmatpush3.bf16.msk.msra.mxu0 %vm417_vm4, %v418_v11  ;;  %v304_v23 = vld [vmem:[%s526_s22] sm:$0x1] }
  0x1b   : > { %v221_v28 = vld [vmem:[%s521_s19 + $0x10] sm:$0xff]  ;;  %v222_v31 = vld [vmem:[%s521_s19 + $0x18] sm:$0xff] }
  0x1c   : > { %v307_v15 = vsel %vm193_vm1, %v305_v13, 0.0  ;;  %v308_v16 = vsel %vm193_vm1, %v306_v14, 0.0 }
  0x1d   : > { %v309_v17 = vadd.f32 %v308_v16, %v307_v15 }
  0x1f   : > { %v310_v18 = vrot.slane %v309_v17, 4 }
  0x21   : > { %v311_v19 = vadd.f32 %v310_v18, %v309_v17 }
  0x23   : > { %v312_v20 = vrot.slane %v311_v19, 2 }
  0x25   : > { %v313_v21 = vadd.f32 %v312_v20, %v311_v19 }
  0x27   : > { %v314_v22 = vrot.slane %v313_v21, 1 }
  0x29   : > { %v315_v24 = vadd.f32 %v314_v22, %v313_v21 }
  0x2b   : > { %v316_v25 = vadd.f32 %v315_v24, %v304_v23 }
  0x2d   : > { %318 = vst.msk [vmem:[%s526_s22] sm:$0x1] %vm198_vm0, %v316_v25 }
  0x80   : > { %v231_v26 = vpop.trf.xlu0 }
  0x81   : > { %430 = vmatprep.mubr.msk.bf16.mxu0 %vm239_vm5, %v231_v26 }
  0x84   : > { %v232_v27 = vpop.trf.xlu0 }
  0x85   : > { %431 = vmatmul.mubr.msk.bf16.vlgmr.msra.gmra.mrb[0].mxu0 %vm239_vm5, %v232_v27 }
 0x158   : > { %v432_v30 = vpop.f32.mrb[0].mxu0 }
 0x159   : > { %v297_v32 = vadd.f32 %v432_v30, %v221_v28  ;;  %v280_v33 = vpop.f32.mrb[1].mxu0 }
 0x15a   : > { %v295_v35 = vadd.f32 %v280_v33, %v219_v29  ;;  %v433_v36 = vpop.f32.mrb[2].mxu0 }
 0x15b   : > { %302 = vst.msk [vmem:[%s521_s19 + $0x10] sm:$0xff] %vm193_vm1, %v297_v32  ;;  %v298_v37 = vadd.f32 %v433_v36, %v222_v31  ;;  %v283_v38 = vpop.f32.mrb[3].mxu0 }
 0x15c   : > { %300 = vst.msk [vmem:[%s521_s19] sm:$0xff] %vm193_vm1, %v295_v35  ;;  %v296_v39 = vadd.f32 %v283_v38, %v220_v34 }
 0x15d   : > { %303 = vst.msk [vmem:[%s521_s19 + $0x18] sm:$0xff] %vm193_vm1, %v298_v37 }
 0x15e   : > { %301 = vst.msk [vmem:[%s521_s19 + $0x8] sm:$0xff] %vm193_vm1, %v296_v39 }
 0x15f PF: > { %s13_s11 = sadd.s32 1, %s482_s11   ;;  %s570_s9 = smov %s478_s10 }
 0x160   : > { %p10_p7 = scmp.ge.s32.totalorder %s13_s11, 4   ;;  %s571_s10 = smov %s573_s12 }
 0x162   :  { %12 = sbr.rel (!%p10_p7) target bundleno = 2 (0x2), region = 70 }

// kernel: aufea_forward.3
= control target key start
LH: loop header
LB: loop body
LE: loop exit
PB: predicated region body
PF: predicated region fallthrough
CT: control target
= control target key end

     0   :  { %9 = vsyncpa [#allocation3], 0  ;;  %s802_s0 = inlined_call_operand.vmem [shape: f32[2,8,32], index: 0, kind: input, shape index: {}]   ;;  %s803_s1 = inlined_call_operand.vmem [shape: bf16[4,32,32], index: 1, kind: input, shape index: {}]   ;;  %s804_s2 = inlined_call_operand.vmem [shape: f32[4,1,32], index: 2, kind: input, shape index: {}]   ;;  %s805_s3 = inlined_call_operand.vmem [shape: f32[4,1,32], index: 3, kind: input, shape index: {}]   ;;  %s806_s4 = inlined_call_operand.hbm [shape: f32[2,4,8,32], index: 4, kind: output, shape index: {}]  }
   0x1   :  { %11 = vsyncpa [#allocation3 + $0x1], 0  ;;  %s672_s15 = smov 0   ;;  %s674_s16 = smov 0  }
   0x2   :  { %s676_s17 = smov 0   ;;  %s678_s18 = smov 0  }
   0x3   :  { %s680_s19 = smov 0   ;;  %s682_s20 = smov 0  }
   0x4 LB: > { %s469_s21 = sadd.s32 4294967295, %s639_s20   ;;  %s470_s22 = sadd.s32 4294967294, %s639_s20   ;;  %s639_s20 = sphi %s682_s20, %s17_s20   ;;  %s635_s19 = sphi %s680_s19, %s813_s19   ;;  %s631_s18 = sphi %s678_s18, %s812_s18   ;;  %s627_s17 = sphi %s676_s17, %s811_s17   ;;  %s623_s16 = sphi %s674_s16, %s810_s16   ;;  %s619_s15 = sphi %s672_s15, %s809_s15  }
   0x5   : > { %s26_s23 = sadd.s32 1, %s635_s19  ;;  %s142_s24 = sadd.s32 1, %s627_s17 }
   0x6   : > { %p27_p0 = scmp.ge.s32.totalorder %s26_s23, 4  ;;  %p152_p1 = scmp.ne.s32.totalorder %s627_s17, %s623_s16 }
   0x7   : > { %p153_p2 = scmp.eq.s32.totalorder %s469_s21, 3  ;;  %p158_p3 = scmp.ne.s32.totalorder %s623_s16, %s619_s15 }
   0x8   : > { %s815_s23 = smov (%p27_p0, %s26_s23), 0  ;;  %p159_p5 = scmp.eq.s32.totalorder %s470_s22, 3 }
   0x9   : > { %p712_p4 = por %p153_p2, %p152_p1  ;;  %s138_s26 = ssub.s32 %s635_s19, %s815_s23 }
   0xa   : > { %p474_p6 = scmp.ge.s32.totalorder %s639_s20, 1  ;;  %p140_p7 = scmp.eq.s32.totalorder %s138_s26, 0 }
   0xb   : > { %p719_p8 = por %p159_p5, %p158_p3  ;;  %p206_p9 = scmp.lt.s32.totalorder %s639_s20, 5 }
   0xc   : > { %s725_s28 = scalar_select %p140_p7, %s627_s17, %s142_s24  }
   0xd   : > { %p207_p10 = pnand %p474_p6, %p206_p9 }
   0xe   : > { %p249_p11 = scmp.lt.s32.totalorder (!%p207_p10), %s631_s18, 3  ;;  %v641_v0 = vmov (!%p207_p10), 0.0   ;;  %vm642_vm0 = vmmov (!%p207_p10), 0   ;;  %v262_v3 = vld [vmem:[%s802_s0] sm:$0xff] (!%p207_p10)  ;;  %v263_v4 = vld [vmem:[%s802_s0 + $0x8] sm:$0xff] (!%p207_p10)  ;;  %vm281_vm1 = vcmask (!%p207_p10), 261120  }
   0xf   : > { %210 = sbr.rel (%p207_p10) target bundleno = 270 (0x10e), region = 36  ;;  %491 = vmatprep.subr.bf16.mxu0 (!%p207_p10), %v641_v0  ;;  %495 = vmatprep.mubr.msk.bf16.mxu0 (!%p207_p10), %vm642_vm0, %v641_v0  ;;  %v264_v5 = vpack.c.bf16 (!%p207_p10), %v263_v4, %v262_v3  ;;  %s240_s12 = sand.u32 (!%p207_p10), 1, %s623_s16  }
  0x10   : > { %s475_s22 = sshll.u32 (!%p207_p10), %s240_s12, 4  ;;  %s756_s10 = scalar_lea.sflag (!%p207_p10), [#allocation3], %s240_s12 }
  0x11   : > { %s242_s5 = scalar_lea.vmem (!%p207_p10), [#allocation2], %s475_s22  ;;  %s643_s11 = smov (!%p207_p10), [#allocation2]  }
  0x12   : > { %s364_s6 = sshll.u32 (!%p207_p10), %s242_s5, 4  ;;  %s565_s13 = sshll.u32 (!%p207_p10), %s643_s11, 4  ;;  %s747_s6 = int_to_ptr.vmem [resolvable:$true] %s364_s6  ;;  %s566_s13 = int_to_ptr.vmem [resolvable:$false] %s565_s13 }
  0x13   : > { %s567_s14 = scalar_lea.vmem (!%p207_p10), %s566_s13, 512  ;;  %p568_p1 = scmp.lt.s32.totalorder (!%p207_p10), %s747_s6, %s566_s13 }
  0x16   : > { %s250_s29 = scalar_select %p249_p11, %s631_s18, 3 }
  0x18   : > { %s487_s30 = sshll.u32 %s250_s29, 4  ;;  %s256_s21 = scalar_lea.vmem %s804_s2, %s250_s29 }
  0x19   : > { %s253_s7 = scalar_lea.vmem %s803_s1, %s487_s30  ;;  %s259_s30 = scalar_lea.vmem %s805_s3, %s250_s29  ;;  %v481_v6 = vld [vmem:[%s256_s21] ss:$0 sm:$0xff] }
  0x1a   : > { %v559_v1 = vld [vmem:[%s253_s7] sm:$0xff]   ;;  %v560_v2 = vld [vmem:[%s253_s7 + $0x8] sm:$0xff]   ;;  %s484_s7 = sshll.u32 %s631_s18, 7  ;;  %s561_s18 = scalar_lea.vmem %s747_s6, 256 }
  0x1b   : > { %492 = vmatpush3.bf16.msra.mxu0 %v559_v1  ;;  %v482_v8 = vld [vmem:[%s259_s30] ss:$0 sm:$0xff]  ;;  %s752_s9 = scalar_lea.hbm %s806_s4, %s484_s7  ;;  %p562_p12 = scmp.ne.s32.totalorder %s747_s6, %s561_s18 }
  0x1c   : > { %493 = vmatprep.subr.bf16.mxu0 %v641_v0  ;;  %p569_p2 = scmp.lt.s32.totalorder %s567_s14, %s561_s18 }
  0x1d   : > { %p563_p13 = pnand %p562_p12, %p712_p4 }
  0x1e   : > { %p570_p3 = por %p569_p2, %p568_p1 }
  0x1f   : > { %494 = vmatpush3.bf16.msra.mxu0 %v560_v2  ;;  %p564_p0 = pneg %p563_p13 }
  0x21   : > { %p571_p5 = pnand %p570_p3, %p564_p0 }
  0x22   : > { %496 = vmatmul.mubr.msk.bf16.vlgmr.msra.gmra.mrb[0].mxu0 %vm281_vm1, %v264_v5 }
  0xf5   : > { %v319_v7 = vpop.f32.mrb[0].mxu0 }
  0xf6   : > { %v333_v9 = vmul.f32 %v481_v6, %v319_v7  ;;  %v497_v10 = vpop.f32.mrb[1].mxu0 }
  0xf7   : > { %v322_v11 = vpop.f32.mrb[2].mxu0 }
  0xf8   : > { %v342_v12 = vadd.f32 %v482_v8, %v333_v9  ;;  %v334_v13 = vmul.f32 %v481_v6, %v322_v11  ;;  %v498_v14 = vpop.f32.mrb[3].mxu0 }
  0xfa   : > { %v344_v15 = vmax.f32 %v342_v12, 0.0  ;;  %v343_v16 = vadd.f32 %v482_v8, %v334_v13 }
  0xfc   : > { %346 = vst.msk [vmem:[%s242_s5] sm:$0xff] %vm281_vm1, %v344_v15  ;;  %v345_v17 = vmax.f32 %v343_v16, 0.0 }
  0xfe   : > { %347 = vst.msk [vmem:[%s242_s5 + $0x8] sm:$0xff] %vm281_vm1, %v345_v17 }
  0xff   : > { %574 = shalt.err (!%p571_p5)
}
 0x100   : > { %s575_s12 = scalar_lea.hbm %s752_s9, 256  ;;  %s579_s24 = scalar_lea.hbm %s806_s4, 1024 }
 0x101   : > { %p576_p6 = scmp.ne.s32.totalorder %s752_s9, %s575_s12  ;;  %p580_p10 = scmp.lt.u32.totalorder %s752_s9, %s806_s4 }
 0x102   : > { %p581_p11 = scmp.lt.u32.totalorder %s579_s24, %s575_s12  ;;  %p583_p13 = scmp.lt.u32.totalorder %s575_s12, %s752_s9 }
 0x103   : > { %p577_p7 = pnand %p576_p6, %p712_p4 }
 0x104   : > { %p582_p12 = por %p581_p11, %p580_p10 }
 0x105   : > { %p578_p9 = pneg %p577_p7 }
 0x106   : > { %p584_p0 = por %p583_p13, %p582_p12 }
 0x108   : > { %p585_p1 = pnand %p584_p0, %p578_p9 }
 0x10a   : > { %588 = shalt.err (!%p585_p1)
}
 0x10b   : > { %s644_s5 = smov 128   ;;  %s645_s7 = smov 512  }
 0x10c   : > { %s646_s29 = smov 8  }
 0x10d   : > { %499 = dma.vmem_to_hbm [thread:$0]  (%p712_p4), %s747_s6, 256, %s752_s9, %s756_s10, %s644_s5, %s645_s7, %s646_s29  }
 0x10e PF: > { %p505_p2 = scmp.ge.s32.totalorder %s639_s20, 2  ;;  %s379_s8 = sand.u32 1, %s619_s15  }
 0x10f   : > { %s380_s18 = scalar_lea.sflag [#allocation3], %s379_s8 }
 0x110   : > { %p502_p3 = pnand %p505_p2, %p719_p8 }
 0x112   : > { %614 = dma.done.wait (!%p502_p3), %s380_s18, 256  }
 0x113   : > { %616 = vsyncadd (!%p502_p3), %s380_s18, 4294967040  ;;  %s17_s20 = sadd.s32 1, %s639_s20   ;;  %s809_s15 = smov %s623_s16 }
 0x114   : > { %p14_p5 = scmp.ge.s32.totalorder %s17_s20, 6   ;;  %s810_s16 = smov %s627_s17 }
 0x115   : > { %s811_s17 = smov %s725_s28  ;;  %s812_s18 = smov %s635_s19 }
 0x116   : > { %s813_s19 = smov %s815_s23  ;;  %16 = sbr.rel (!%p14_p5) target bundleno = 4 (0x4), region = 80 }
 0x11d   :  { %385 = vsyncpa [#allocation3], 1 }
 0x11e   :  { %387 = vsyncpa [#allocation3 + $0x1], 1 }

</bundles_post_ra>
